<compile_context>
chip_gen: v5e
topology: v5e:2x2
jax: 0.10.0
libtpu: 0.0.40
codegen_flags: <defaults>
</compile_context>

<pallas_src>
import functools

import jax
import jax.numpy as jnp
from jax.experimental import pallas as pl
from jax.experimental.pallas import tpu as pltpu

_LANE = 128      # lane width of a vreg
_SUBLANE = 8     # sublane height of a vreg


def _round_up(n: int, m: int) -> int:
    return ((n + m - 1) // m) * m


def _pad2d(a, rows, cols):
    r, c = a.shape
    return jnp.pad(a, ((0, rows - r), (0, cols - c)))


def _pad_params(w1, b1, w2, b2):
    """Zero-pad all lane dims to multiples of 128 (padding is inert: zeros)."""
    d, h = w1.shape
    c = w2.shape[1]
    dp, hp, cp = _round_up(d, _LANE), _round_up(h, _LANE), _round_up(c, _LANE)
    w1p = _pad2d(w1.astype(jnp.float32), dp, hp)
    b1p = _pad2d(b1.astype(jnp.float32).reshape(1, h), 1, hp)
    w2p = _pad2d(w2.astype(jnp.float32), hp, cp)
    b2p = _pad2d(b2.astype(jnp.float32).reshape(1, c), 1, cp)
    return w1p, b1p, w2p, b2p, dp, hp, cp


def _mlp_argmax_kernel(x_ref, w1_ref, b1_ref, w2_ref, b2_ref,
                       logits_ref, pred_ref, *, num_classes):
    # x:(TM, DP)  w1:(DP, HP)  b1:(1, HP)  w2:(HP, CP)  b2:(1, CP)
    # logits:(TM, CP)  pred:(TM, 1)
    x = x_ref[...]
    h = jnp.dot(x, w1_ref[...], preferred_element_type=jnp.float32) + b1_ref[...]
    h = jnp.maximum(h, 0.0)  # ReLU
    logits = jnp.dot(h, w2_ref[...], preferred_element_type=jnp.float32) + b2_ref[...]
    logits_ref[...] = logits.astype(logits_ref.dtype)

    # Fused argmax over the real (unpadded) classes: first index of row max.
    col = jax.lax.broadcasted_iota(jnp.int32, logits.shape, 1)     # (TM, CP)
    masked = jnp.where(col < num_classes, logits, -jnp.inf)
    row_max = jnp.max(masked, axis=-1, keepdims=True)              # lane reduce
    idx = jnp.where(masked == row_max, col, logits.shape[1])
    pred_ref[...] = jnp.min(idx, axis=-1, keepdims=True).astype(jnp.int32)


def _mlp_pallas(x_pad, w1p, b1p, w2p, b2p, *, num_classes, tm):
    m_pad, dp = x_pad.shape
    hp = w1p.shape[1]
    cp = w2p.shape[1]
    kernel = functools.partial(_mlp_argmax_kernel, num_classes=num_classes)
    out_shape = (jax.ShapeDtypeStruct((m_pad, cp), jnp.float32),
                 jax.ShapeDtypeStruct((m_pad, 1), jnp.int32))

    if m_pad == tm:
        # Single tile: gridless call, every operand one whole-array VMEM block
        # (avoids the ~0.35us per-grid-step pipeline prologue/epilogue).
        vmem = pl.BlockSpec(memory_space=pltpu.MemorySpace.VMEM)
        return pl.pallas_call(
            kernel,
            out_shape=out_shape,
            in_specs=[vmem] * 5,
            out_specs=(vmem, vmem),
        )(x_pad, w1p, b1p, w2p, b2p)

    # Batched: grid over batch tiles, weights/biases fully VMEM-resident.
    grid = (m_pad // tm,)
    return pl.pallas_call(
        kernel,
        out_shape=out_shape,
        grid_spec=pltpu.PrefetchScalarGridSpec(
            num_scalar_prefetch=0,
            grid=grid,
            in_specs=[
                pl.BlockSpec((tm, dp), lambda i: (i, 0)),
                pl.BlockSpec((dp, hp), lambda i: (0, 0)),
                pl.BlockSpec((1, hp), lambda i: (0, 0)),
                pl.BlockSpec((hp, cp), lambda i: (0, 0)),
                pl.BlockSpec((1, cp), lambda i: (0, 0)),
            ],
            out_specs=[
                pl.BlockSpec((tm, cp), lambda i: (i, 0)),
                pl.BlockSpec((tm, 1), lambda i: (i, 0)),
            ],
        ),
        compiler_params=pltpu.CompilerParams(
            # Batch tiles are independent -> sharded across both TCs on v7x.
            dimension_semantics=("parallel",),
        ),
    )(x_pad, w1p, b1p, w2p, b2p)


@jax.jit
def _forward_single(x, w1, b1, w2, b2):
    d = w1.shape[0]
    c = w2.shape[1]
    if x.size != d:
        raise ValueError(f"x has {x.size} elements, expected input_size={d}")
    x_flat = jnp.reshape(x.astype(jnp.float32), (1, d))     # torch-style flatten
    w1p, b1p, w2p, b2p, dp, _, _ = _pad_params(w1, b1, w2, b2)
    x_pad = _pad2d(x_flat, _SUBLANE, dp)                    # sublane-dense (8, DP)
    logits_p, preds_p = _mlp_pallas(x_pad, w1p, b1p, w2p, b2p,
                                    num_classes=c, tm=_SUBLANE)
    return logits_p[0, :c], preds_p[0, 0]


@jax.jit
def _forward_batched(xs, w1, b1, w2, b2):
    d = w1.shape[0]
    c = w2.shape[1]
    b = xs.shape[0]
    if xs.size != b * d:
        raise ValueError(f"xs has {xs.size} elements, expected batch*{d}")
    x2 = jnp.reshape(xs.astype(jnp.float32), (b, d))
    w1p, b1p, w2p, b2p, dp, _, _ = _pad_params(w1, b1, w2, b2)
    tm = 128 if b >= 128 else _round_up(b, _SUBLANE)
    m_pad = _round_up(b, tm)
    x_pad = _pad2d(x2, m_pad, dp)
    logits_p, preds_p = _mlp_pallas(x_pad, w1p, b1p, w2p, b2p,
                                    num_classes=c, tm=tm)
    return logits_p[:b, :c], preds_p[:b, 0]


def naive_net_forward(x, w1, b1, w2, b2):
    """Matches NaiveNet.forward for a single observation: returns logits (C,)."""
    logits, _ = _forward_single(x, w1, b1, w2, b2)
    return logits


def calc_step(x, w1, b1, w2, b2):
    """Matches NaiveNet.calc_step: int argmax of the logits (argmax fused in-kernel)."""
    _, pred = _forward_single(x, w1, b1, w2, b2)
    return int(pred)


def naive_net_forward_batched(xs, w1, b1, w2, b2):
    """Batched forward: xs is (B, *obs_shape); returns (logits (B,C), preds (B,))."""
    return _forward_batched(xs, w1, b1, w2, b2)


if __name__ == "__main__":
    input_size, hidden_size, num_classes = 64, 32, 8

    key = jax.random.PRNGKey(0)
    k_x, k_w1, k_b1, k_w2, k_b2, k_xb = jax.random.split(key, 6)

    # Deterministic parameter init (mimics nn.Linear uniform init); weights are
    # stored transposed vs PyTorch: w1 (D, H), w2 (H, C), so y = x @ W + b.
    lim1 = 1.0 / (input_size ** 0.5)
    lim2 = 1.0 / (hidden_size ** 0.5)
    w1 = jax.random.uniform(k_w1, (input_size, hidden_size), jnp.float32, -lim1, lim1)
    b1 = jax.random.uniform(k_b1, (hidden_size,), jnp.float32, -lim1, lim1)
    w2 = jax.random.uniform(k_w2, (hidden_size, num_classes), jnp.float32, -lim2, lim2)
    b2 = jax.random.uniform(k_b2, (num_classes,), jnp.float32, -lim2, lim2)

    # --- single observation (module semantics: flatten -> fc1 -> relu -> fc2) ---
    x = jax.random.normal(k_x, (8, 8), jnp.float32)  # flattened to 64 inside
    logits = jax.block_until_ready(naive_net_forward(x, w1, b1, w2, b2))

    ref = jnp.maximum(x.reshape(-1) @ w1 + b1, 0.0) @ w2 + b2
    assert logits.shape == (num_classes,)
    assert jnp.allclose(logits, ref, atol=1e-5, rtol=1e-5)

    pred = calc_step(x, w1, b1, w2, b2)
    assert pred == int(jnp.argmax(ref))

    # --- batched path (fills MXU/vreg tiles; grids over batch when large) ---
    batch = 16
    xb = jax.random.normal(k_xb, (batch, 8, 8), jnp.float32)
    logits_b, preds_b = naive_net_forward_batched(xb, w1, b1, w2, b2)
    jax.block_until_ready((logits_b, preds_b))

    ref_b = jnp.maximum(xb.reshape(batch, -1) @ w1 + b1, 0.0) @ w2 + b2
    assert logits_b.shape == (batch, num_classes)
    assert jnp.allclose(logits_b, ref_b, atol=1e-5, rtol=1e-5)
    assert jnp.array_equal(preds_b, jnp.argmax(ref_b, axis=-1).astype(jnp.int32))

    print("KERNEL_OK")
</pallas_src>

<mosaic_0001>
module attributes {stable_mosaic.version = 11 : i64} {
  func.func @_mlp_argmax_kernel(%arg0: memref<8x128xf32, #tpu.memory_space<vmem>>, %arg1: memref<128x128xf32, #tpu.memory_space<vmem>>, %arg2: memref<1x128xf32, #tpu.memory_space<vmem>>, %arg3: memref<128x128xf32, #tpu.memory_space<vmem>>, %arg4: memref<1x128xf32, #tpu.memory_space<vmem>>, %arg5: memref<8x128xf32, #tpu.memory_space<vmem>>, %arg6: memref<8x1xi32, #tpu.memory_space<vmem>>) attributes {dimension_semantics = [], scalar_prefetch = 0 : i64, scratch_operands = 0 : i64, tpu.core_type = #tpu.core_type<tc>} {
    %c0 = arith.constant 0 : index
    %c0_0 = arith.constant 0 : index
    %0 = vector.load %arg0[%c0, %c0_0] : memref<8x128xf32, #tpu.memory_space<vmem>>, vector<8x128xf32>
    %c0_1 = arith.constant 0 : index
    %c0_2 = arith.constant 0 : index
    %1 = vector.load %arg1[%c0_1, %c0_2] : memref<128x128xf32, #tpu.memory_space<vmem>>, vector<128x128xf32>
    %cst = arith.constant dense<0.000000e+00> : vector<8x128xf32>
    %2 = tpu.matmul %0, %1, %cst {dimension_numbers = #tpu.dot_dimension_numbers<[1], [0], [0], [1], [0, 0, 1, 1], [], []>} : vector<8x128xf32>, vector<128x128xf32>, vector<8x128xf32> -> vector<8x128xf32>
    %c0_3 = arith.constant 0 : index
    %c0_4 = arith.constant 0 : index
    %3 = vector.load %arg2[%c0_3, %c0_4] : memref<1x128xf32, #tpu.memory_space<vmem>>, vector<1x128xf32>
    %4 = vector.broadcast %3 : vector<1x128xf32> to vector<8x128xf32>
    %5 = arith.addf %2, %4 : vector<8x128xf32>
    %cst_5 = arith.constant 0.000000e+00 : f32
    %6 = vector.broadcast %cst_5 : f32 to vector<8x128xf32>
    %7 = arith.maximumf %5, %6 : vector<8x128xf32>
    %c0_6 = arith.constant 0 : index
    %c0_7 = arith.constant 0 : index
    %8 = vector.load %arg3[%c0_6, %c0_7] : memref<128x128xf32, #tpu.memory_space<vmem>>, vector<128x128xf32>
    %cst_8 = arith.constant dense<0.000000e+00> : vector<8x128xf32>
    %9 = tpu.matmul %7, %8, %cst_8 {dimension_numbers = #tpu.dot_dimension_numbers<[1], [0], [0], [1], [0, 0, 1, 1], [], []>} : vector<8x128xf32>, vector<128x128xf32>, vector<8x128xf32> -> vector<8x128xf32>
    %c0_9 = arith.constant 0 : index
    %c0_10 = arith.constant 0 : index
    %10 = vector.load %arg4[%c0_9, %c0_10] : memref<1x128xf32, #tpu.memory_space<vmem>>, vector<1x128xf32>
    %11 = vector.broadcast %10 : vector<1x128xf32> to vector<8x128xf32>
    %12 = arith.addf %9, %11 : vector<8x128xf32>
    %c0_11 = arith.constant 0 : index
    %c0_12 = arith.constant 0 : index
    %13 = vector.load %arg5[%c0_11, %c0_12] : memref<8x128xf32, #tpu.memory_space<vmem>>, vector<8x128xf32>
    tpu.vector_store %arg5[%c0_11, %c0_12], %12 {strides = array<i32>} : memref<8x128xf32, #tpu.memory_space<vmem>>, vector<8x128xf32>,
    %14 = tpu.iota {dimensions = array<i32: 1>} : vector<8x128xi32>
    %c8_i32 = arith.constant 8 : i32
    %15 = vector.broadcast %c8_i32 : i32 to vector<8x128xi32>
    %16 = arith.cmpi slt, %14, %15 : vector<8x128xi32>
    %cst_13 = arith.constant 0xFF800000 : f32
    %17 = vector.broadcast %cst_13 : f32 to vector<8x128xf32>
    %18 = arith.select %16, %12, %17 : vector<8x128xi1>, vector<8x128xf32>
    %cst_14 = arith.constant dense<0xFF800000> : vector<8xf32>
    %19 = vector.multi_reduction <maximumf>, %18, %cst_14 [1] : vector<8x128xf32> to vector<8xf32>
    %20 = vector.shape_cast %19 : vector<8xf32> to vector<8x1xf32>
    %21 = vector.broadcast %20 : vector<8x1xf32> to vector<8x128xf32>
    %22 = arith.cmpf oeq, %18, %21 : vector<8x128xf32>
    %c128_i32 = arith.constant 128 : i32
    %23 = vector.broadcast %c128_i32 : i32 to vector<8x128xi32>
    %24 = arith.select %22, %14, %23 : vector<8x128xi1>, vector<8x128xi32>
    %cst_15 = arith.constant dense<2147483647> : vector<8xi32>
    %25 = vector.multi_reduction <minsi>, %24, %cst_15 [1] : vector<8x128xi32> to vector<8xi32>
    %26 = vector.shape_cast %25 : vector<8xi32> to vector<8x1xi32>
    %c0_16 = arith.constant 0 : index
    %c0_17 = arith.constant 0 : index
    %27 = vector.load %arg6[%c0_16, %c0_17] : memref<8x1xi32, #tpu.memory_space<vmem>>, vector<8x1xi32>
    tpu.vector_store %arg6[%c0_16, %c0_17], %26 {strides = array<i32>} : memref<8x1xi32, #tpu.memory_space<vmem>>, vector<8x1xi32>,
    return
  }
}

</mosaic_0001>

<bundles_post_ra>
// kernel: _forward_single.1
= control target key start
LH: loop header
LB: loop body
LE: loop exit
PB: predicated region body
PF: predicated region fallthrough
CT: control target
= control target key end

     0   :  { %v105_v37 = vlaneseq  ;;  %vm127_vm3 = vcmask 7168   ;;  %s285_s1 = inlined_call_operand.vmem [shape: f32[128,128], index: 1, kind: input, shape index: {}]   ;;  %s286_s3 = inlined_call_operand.vmem [shape: f32[128,128], index: 3, kind: input, shape index: {}]   ;;  %s287_s2 = inlined_call_operand.vmem [shape: f32[1,128], index: 2, kind: input, shape index: {}]   ;;  %s288_s0 = inlined_call_operand.vmem [shape: f32[8,128], index: 0, kind: input, shape index: {}]   ;;  %s289_s4 = inlined_call_operand.vmem [shape: f32[1,128], index: 4, kind: input, shape index: {}]   ;;  %s290_s5 = inlined_call_operand.vmem [shape: f32[8,128], index: 5, kind: output, shape index: {0}]   ;;  %s291_s6 = inlined_call_operand.vmem [shape: s32[8,1], index: 6, kind: output, shape index: {1}]  }
   0x1   :  { %v38_v0 = vld [vmem:[%s285_s1 + $0x78] sm:$0xff]  ;;  %v37_v1 = vld [vmem:[%s285_s1 + $0x70] sm:$0xff]  ;;  %v36_v2 = vld [vmem:[%s285_s1 + $0x68] sm:$0xff] }
   0x2   :  { %43 = vmatpush.msra.mxu0 %v38_v0  ;;  %v35_v3 = vld [vmem:[%s285_s1 + $0x60] sm:$0xff]  ;;  %v79_v4 = vld [vmem:[%s286_s3 + $0x78] sm:$0xff]  ;;  %v78_v6 = vld [vmem:[%s286_s3 + $0x70] sm:$0xff]  ;;  %v106_v38 = vand.u32 127, %v105_v37 }
   0x3   :  { %v34_v5 = vld [vmem:[%s285_s1 + $0x58] sm:$0xff]  ;;  %84 = vmatpush.msra.mxu1 %v79_v4  ;;  %v77_v7 = vld [vmem:[%s286_s3 + $0x68] sm:$0xff]  ;;  %v33_v8 = vld [vmem:[%s285_s1 + $0x50] sm:$0xff] }
   0x4   :  { %44 = vmatpush.msra.mxu0 %v37_v1  ;;  %v76_v9 = vld [vmem:[%s286_s3 + $0x60] sm:$0xff]  ;;  %v32_v10 = vld [vmem:[%s285_s1 + $0x48] sm:$0xff]  ;;  %v75_v11 = vld [vmem:[%s286_s3 + $0x58] sm:$0xff]  ;;  %vm107_vm0 = vcmp.lt.s32.totalorder %v106_v38, 8 }
   0x5   :  { %85 = vmatpush.msra.mxu1 %v78_v6  ;;  %v31_v12 = vld [vmem:[%s285_s1 + $0x40] sm:$0xff]  ;;  %v74_v13 = vld [vmem:[%s286_s3 + $0x50] sm:$0xff]  ;;  %v30_v14 = vld [vmem:[%s285_s1 + $0x38] sm:$0xff] }
   0x6   :  { %45 = vmatpush.msra.mxu0 %v36_v2  ;;  %v73_v15 = vld [vmem:[%s286_s3 + $0x48] sm:$0xff]  ;;  %v29_v16 = vld [vmem:[%s285_s1 + $0x30] sm:$0xff]  ;;  %v72_v17 = vld [vmem:[%s286_s3 + $0x40] sm:$0xff] }
   0x7   :  { %86 = vmatpush.msra.mxu1 %v77_v7  ;;  %v28_v18 = vld [vmem:[%s285_s1 + $0x28] sm:$0xff]  ;;  %v71_v19 = vld [vmem:[%s286_s3 + $0x38] sm:$0xff]  ;;  %v27_v20 = vld [vmem:[%s285_s1 + $0x20] sm:$0xff] }
   0x8   :  { %46 = vmatpush.msra.mxu0 %v35_v3  ;;  %v70_v21 = vld [vmem:[%s286_s3 + $0x30] sm:$0xff]  ;;  %v26_v22 = vld [vmem:[%s285_s1 + $0x18] sm:$0xff]  ;;  %v69_v23 = vld [vmem:[%s286_s3 + $0x28] sm:$0xff] }
   0x9   :  { %87 = vmatpush.msra.mxu1 %v76_v9  ;;  %v25_v24 = vld [vmem:[%s285_s1 + $0x10] sm:$0xff]  ;;  %v68_v25 = vld [vmem:[%s286_s3 + $0x20] sm:$0xff]  ;;  %v24_v26 = vld [vmem:[%s285_s1 + $0x8] sm:$0xff] }
   0xa   :  { %47 = vmatpush.msra.mxu0 %v34_v5  ;;  %v67_v27 = vld [vmem:[%s286_s3 + $0x18] sm:$0xff]  ;;  %v23_v28 = vld [vmem:[%s285_s1] sm:$0xff]  ;;  %v66_v30 = vld [vmem:[%s286_s3 + $0x10] sm:$0xff] }
   0xb   :  { %88 = vmatpush.msra.mxu1 %v75_v11  ;;  %v22_v29 = vld [vmem:[%s288_s0] sm:$0xff]  ;;  %v65_v31 = vld [vmem:[%s286_s3 + $0x8] sm:$0xff] }
   0xc   :  { %48 = vmatpush.msra.mxu0 %v33_v8  ;;  %v64_v32 = vld [vmem:[%s286_s3] sm:$0xff] }
   0xd   :  { %89 = vmatpush.msra.mxu1 %v74_v13  ;;  %v137_v33 = vld [vmem:[%s287_s2] ss:$0 sm:$0xff] }
   0xe   :  { %49 = vmatpush.msra.mxu0 %v32_v10  ;;  %v138_v39 = vld [vmem:[%s289_s4] ss:$0 sm:$0xff] }
   0xf   :  { %90 = vmatpush.msra.mxu1 %v73_v15 }
  0x10   :  { %50 = vmatpush.msra.mxu0 %v31_v12 }
  0x11   :  { %91 = vmatpush.msra.mxu1 %v72_v17 }
  0x12   :  { %51 = vmatpush.msra.mxu0 %v30_v14 }
  0x13   :  { %92 = vmatpush.msra.mxu1 %v71_v19 }
  0x14   :  { %52 = vmatpush.msra.mxu0 %v29_v16 }
  0x15   :  { %93 = vmatpush.msra.mxu1 %v70_v21 }
  0x16   :  { %53 = vmatpush.msra.mxu0 %v28_v18 }
  0x17   :  { %94 = vmatpush.msra.mxu1 %v69_v23 }
  0x18   :  { %54 = vmatpush.msra.mxu0 %v27_v20 }
  0x19   :  { %95 = vmatpush.msra.mxu1 %v68_v25 }
  0x1a   :  { %55 = vmatpush.msra.mxu0 %v26_v22 }
  0x1b   :  { %96 = vmatpush.msra.mxu1 %v67_v27 }
  0x1c   :  { %56 = vmatpush.msra.mxu0 %v25_v24 }
  0x1d   :  { %97 = vmatpush.msra.mxu1 %v66_v30 }
  0x1e   :  { %57 = vmatpush.msra.mxu0 %v24_v26 }
  0x1f   :  { %98 = vmatpush.msra.mxu1 %v65_v31 }
  0x20   :  { %58 = vmatpush.msra.mxu0 %v23_v28 }
  0x21   :  { %59 = vmatmul.f32.vlgmr.msra.gmra.mxu0 %v22_v29  ;;  %99 = vmatpush.msra.mxu1 %v64_v32 }
  0x9e   :  { %v60_v34 = vpop.f32.mrf.mxu0 }
  0x9f   :  { %v61_v35 = vadd.f32 %v137_v33, %v60_v34 }
  0xa1   :  { %v63_v36 = vmax.f32 %v61_v35, 0.0 }
  0xa3   :  { %100 = vmatmul.f32.vlgmr.msra.gmra.mxu1 %v63_v36 }
 0x120   :  { %v101_v40 = vpop.f32.mrf.mxu1 }
 0x121   :  { %v102_v41 = vadd.f32 %v138_v39, %v101_v40 }
 0x123   :  { %104 = vst [vmem:[%s290_s5] sm:$0xff] %v102_v41  ;;  %v108_v42 = vsel %vm107_vm0, %v102_v41, -inf }
 0x124   :  { %109 = vmax.xlane.f32.xlu0 %v108_v42 }
 0x197   :  { %v110_v43 = vpop.xlane.xlu0 %109 }
 0x198   :  { %vm111_vm1 = vcmp.eq.f32.partialorder %v108_v42, %v110_v43 }
 0x199   :  { %v112_v44 = vsel %vm111_vm1, %v106_v38, 128 }
 0x19a   :  { %v114_v45 = vshra.s32 %v112_v44, 16  ;;  %v113_v47 = vand.u32 65535, %v112_v44 }
 0x19c   :  { %v116_v46 = vcvt.s32.f32 %v114_v45  ;;  %v115_v49 = vcvt.s32.f32 %v113_v47 }
 0x19e   :  { %117 = vmin.xlane.f32.xlu0 %v116_v46 }
 0x211   :  { %v118_v48 = vpop.xlane.xlu0 %117 }
 0x212   :  { %vm119_vm2 = vcmp.eq.f32.partialorder %v116_v46, %v118_v48  ;;  %v124_v51 = vcvt.f32.s32 %v118_v48 }
 0x213   :  { %v120_v50 = vsel %vm119_vm2, %v115_v49, inf }
 0x214   :  { %121 = vmin.xlane.f32.xlu1 %v120_v50  ;;  %v125_v53 = vshll.u32 %v124_v51, 16 }
 0x287   :  { %v122_v52 = vpop.xlane.xlu1 %121 }
 0x288   :  { %v123_v54 = vcvt.f32.s32 %v122_v52 }
 0x28a   :  { %v126_v55 = vadd.s32 %v125_v53, %v123_v54 }
 0x28c   :  { %128 = vst.msk [vmem:[%s291_s6] sm:$0xff] %vm127_vm3, %v126_v55 }

</bundles_post_ra>
